<compile_context>
chip_gen: v6e
topology: v6e:2x2x1
jax: 0.10.0
libtpu: 0.0.40
codegen_flags: <defaults>
</compile_context>

<pallas_src>
import jax
import jax.numpy as jnp
import numpy as np
from jax.experimental import pallas as pl
from jax.experimental.pallas import tpu as pltpu

MARGIN = 0.5            # sentence_transformers' default margin
PAIRWISE_EPS = 1e-6     # matches torch.nn.functional.pairwise_distance eps

_MAX_TILE_ROWS = 2048                      # per-review upper bound on tile rows
_VMEM_INPUT_BUDGET = 10 * 1024 * 1024      # 2 inputs x 2 pipeline buffers of (TB, D)
_MIN_SPLIT_ROWS = 256                      # split across TCs only if halves stay >= this


def _cdiv(a, b):
    return -(-a // b)


def _round_up(x, m):
    return ((x + m - 1) // m) * m


def _choose_tiling(batch, hidden, itemsize):
    """Pick (tile_rows, num_tiles). tile_rows is a multiple of 8 (or == batch
    for a single small tile); num_tiles is kept even when > 1 (v7x megacore)."""
    cap = _VMEM_INPUT_BUDGET // max(1, 4 * hidden * itemsize)
    max_tb = max(8, min(_MAX_TILE_ROWS, (cap // 8) * 8))
    if batch <= max_tb:
        if batch < 2 * _MIN_SPLIT_ROWS:
            return batch, 1                    # single tile, block == full dim
        num_tiles = 2                          # balance across the two v7x TCs
    else:
        num_tiles = _cdiv(batch, max_tb)
        if num_tiles % 2:
            num_tiles += 1                     # even tile count for v7x megacore
    tb = _round_up(_cdiv(batch, num_tiles), 8)
    return tb, _cdiv(batch, tb)


def _make_kernel(use_mxu_reduce):
    def kernel(a_ref, b_ref, lbl_ref, dist_ref, lvec_ref):
        # Fused upcast: embeddings stream in their HBM dtype; cast inside the sub.
        diff = (a_ref[...].astype(jnp.float32)
                - b_ref[...].astype(jnp.float32)
                + PAIRWISE_EPS)                                   # [TB, D] f32
        sq = diff * diff
        if use_mxu_reduce:
            # Row-sum on the otherwise-idle MXU (keeps the 2 XLU ports free on
            # v7x).  Exact-to-~f32 accumulation via hi/lo bf16 split: the
            # squared diffs are NOT quantized to a single bf16 pass.
            d_dim = sq.shape[1]
            hi = sq.astype(jnp.bfloat16)
            lo = (sq - hi.astype(jnp.float32)).astype(jnp.bfloat16)
            ones = jnp.ones((d_dim, 128), jnp.bfloat16)
            acc = (jnp.dot(hi, ones, preferred_element_type=jnp.float32)
                   + jnp.dot(lo, ones, preferred_element_type=jnp.float32))
            d2 = acc[:, 0:1]                                      # [TB, 1]
        else:
            # Small / non-128-multiple D: plain keepdims reduce (no [1,TB]
            # sublane->lane relayout).
            d2 = jnp.sum(sq, axis=1, keepdims=True)               # [TB, 1]
        d = jnp.sqrt(d2)                                          # EUP
        lbl = lbl_ref[...]                                        # [TB, 1] f32
        neg = jnp.maximum(MARGIN - d, 0.0)
        dist_ref[...] = d
        # 0.5 * (y * d^2 + (1 - y) * relu(margin - d)^2)
        lvec_ref[...] = 0.5 * (lbl * d2 + (1.0 - lbl) * (neg * neg))
    return kernel


def _contrastive_pallas(rep_anchor, rep_other, labels):
    B, D = rep_anchor.shape
    itemsize = jnp.dtype(rep_anchor.dtype).itemsize
    TB, num_tiles = _choose_tiling(B, D, itemsize)

    lbl = labels.astype(jnp.float32).reshape(B, 1)
    kernel = _make_kernel(use_mxu_reduce=(D >= 128 and D % 128 == 0))

    out_shapes = (
        jax.ShapeDtypeStruct((B, 1), jnp.float32),   # distances
        jax.ShapeDtypeStruct((B, 1), jnp.float32),   # per-example losses
    )
    grid_spec = pltpu.PrefetchScalarGridSpec(
        num_scalar_prefetch=0,
        grid=(num_tiles,),
        in_specs=[
            pl.BlockSpec((TB, D), lambda i: (i, 0)),
            pl.BlockSpec((TB, D), lambda i: (i, 0)),
            pl.BlockSpec((TB, 1), lambda i: (i, 0)),
        ],
        out_specs=[
            pl.BlockSpec((TB, 1), lambda i: (i, 0)),
            pl.BlockSpec((TB, 1), lambda i: (i, 0)),
        ],
    )
    cost = pl.CostEstimate(
        flops=6 * B * D + 10 * B,
        transcendentals=B,
        bytes_accessed=2 * B * D * itemsize + 3 * B * 4,
    )
    dist, lvec = pl.pallas_call(
        kernel,
        out_shape=out_shapes,
        grid_spec=grid_spec,
        compiler_params=pltpu.CompilerParams(
            dimension_semantics=("parallel",),      # shards across TCs on v7x
            vmem_limit_bytes=32 * 1024 * 1024),     # safe on v5e/v6e/v7x
        cost_estimate=cost,
    )(rep_anchor, rep_other, lbl)

    # Per-example vectors; any ragged-tile garbage rows were never written.
    return dist.reshape(-1), lvec.reshape(-1)


contrastive_loss_pallas = jax.jit(_contrastive_pallas)


# ---------------------------------------------------------------------------
# Host-side metric glue (mirrors the reference forward's Python/NumPy code).
# ---------------------------------------------------------------------------
def _get_best_distance_threshold(distances, labels):
    # best threshold for "pred = 1 if distance < threshold" (vectorized O(B^2))
    cands = np.concatenate([distances, [distances.max() + 1.0]])
    preds = (distances[None, :] < cands[:, None]).astype(np.int32)
    accs = (preds == labels[None, :]).mean(axis=1)
    return float(cands[int(np.argmax(accs))])


def _roc_auc(labels, scores):
    # rank-based AUC (ties handled by average rank); scores = -distances
    order = np.argsort(scores)
    ranks = np.empty_like(order, dtype=np.float64)
    sorted_scores = scores[order]
    i, r, n = 0, 1.0, len(scores)
    while i < n:
        j = i
        while j + 1 < n and sorted_scores[j + 1] == sorted_scores[i]:
            j += 1
        avg_rank = (r + (r + (j - i))) / 2.0
        ranks[order[i:j + 1]] = avg_rank
        r += (j - i) + 1
        i = j + 1
    n_pos = int(labels.sum())
    n_neg = n - n_pos
    if n_pos == 0 or n_neg == 0:
        return float("nan")
    sum_pos_ranks = ranks[labels == 1].sum()
    return (sum_pos_ranks - n_pos * (n_pos + 1) / 2.0) / (n_pos * n_neg)


def contrastive_loss_forward(rep_anchor, rep_other, labels, size_average=True):
    dist, lvec = contrastive_loss_pallas(rep_anchor, rep_other, labels)
    jax.block_until_ready((dist, lvec))

    distances = np.asarray(dist)
    losses = np.asarray(lvec)
    labels_np = np.asarray(labels).astype(np.int32)

    best_thr = _get_best_distance_threshold(distances, labels_np)
    preds = (distances < best_thr).astype(np.int32)
    acc_by_best = float((preds == labels_np).mean())

    median_thr = np.median(distances)
    preds_m = (distances < median_thr).astype(np.int32)
    acc_by_median = float((preds_m == labels_np).mean())  # computed, unused (as in ref)
    del acc_by_median

    auc = _roc_auc(labels_np, -distances)

    loss = float(losses.mean()) if size_average else float(losses.sum())
    return loss, acc_by_best, auc


def _jax_reference(a, b, labels):
    diff = a.astype(jnp.float32) - b.astype(jnp.float32) + PAIRWISE_EPS
    d = jnp.sqrt(jnp.sum(diff * diff, axis=1))
    l = 0.5 * (labels * d ** 2
               + (1 - labels) * jnp.maximum(MARGIN - d, 0.0) ** 2)
    return d, l


if __name__ == "__main__":
    key = jax.random.PRNGKey(0)
    k1, k2, k3 = jax.random.split(key, 3)

    # small shapes consistent with the module (sentence-pair embeddings)
    B, D = 8, 32
    rep_anchor = jax.random.normal(k1, (B, D), dtype=jnp.float32)
    rep_other = jax.random.normal(k2, (B, D), dtype=jnp.float32)
    labels = jax.random.bernoulli(k3, 0.5, (B,)).astype(jnp.int32)

    loss, acc_by_best, auc = contrastive_loss_forward(
        rep_anchor, rep_other, labels, size_average=True)

    d_ref, l_ref = _jax_reference(rep_anchor, rep_other, labels)
    assert np.allclose(loss, float(jnp.mean(l_ref)), rtol=1e-5, atol=1e-6)

    # ragged multi-tile path: B=1000 -> TB=504, 2 even tiles, last tile partial
    # (no input padding, MXU row-sum since D % 128 == 0)
    B2, D2 = 1000, 256
    k4, k5, k6 = jax.random.split(jax.random.PRNGKey(1), 3)
    a2 = jax.random.normal(k4, (B2, D2), dtype=jnp.float32)
    b2 = jax.random.normal(k5, (B2, D2), dtype=jnp.float32)
    lab2 = jax.random.bernoulli(k6, 0.5, (B2,)).astype(jnp.int32)
    dist2, lvec2 = contrastive_loss_pallas(a2, b2, lab2)
    jax.block_until_ready((dist2, lvec2))
    d2_ref, l2_ref = _jax_reference(a2, b2, lab2)
    assert dist2.shape == (B2,)
    assert np.allclose(np.asarray(dist2), np.asarray(d2_ref), rtol=1e-4, atol=1e-4)
    assert np.allclose(np.asarray(lvec2), np.asarray(l2_ref), rtol=1e-4, atol=1e-4)

    # bf16 streaming path (halves HBM traffic; f32 upcast fused in-kernel)
    a3 = a2.astype(jnp.bfloat16)
    b3 = b2.astype(jnp.bfloat16)
    dist3, lvec3 = contrastive_loss_pallas(a3, b3, lab2)
    jax.block_until_ready((dist3, lvec3))
    d3_ref, l3_ref = _jax_reference(a3, b3, lab2)   # ref on the same bf16 inputs
    assert np.allclose(np.asarray(dist3), np.asarray(d3_ref), rtol=1e-4, atol=1e-4)
    assert np.allclose(np.asarray(lvec3), np.asarray(l3_ref), rtol=1e-4, atol=1e-4)

    print("KERNEL_OK")
</pallas_src>

<mosaic_0001>
module attributes {stable_mosaic.version = 11 : i64} {
  func.func @kernel(%arg0: i32, %arg1: memref<8x32xf32, #tpu.memory_space<vmem>>, %arg2: memref<8x32xf32, #tpu.memory_space<vmem>>, %arg3: memref<8x1xf32, #tpu.memory_space<vmem>>, %arg4: memref<8x1xf32, #tpu.memory_space<vmem>>, %arg5: memref<8x1xf32, #tpu.memory_space<vmem>>) attributes {dimension_semantics = [#tpu.dimension_semantics<parallel>], iteration_bounds = array<i64: 1>, scalar_prefetch = 0 : i64, scratch_operands = 0 : i64, tpu.core_type = #tpu.core_type<tc>, window_params = [{transform_indices = @transform_0, window_bounds = array<i64: 8, 32>}, {transform_indices = @transform_1, window_bounds = array<i64: 8, 32>}, {transform_indices = @transform_2, window_bounds = array<i64: 8, 1>}, {transform_indices = @transform_3, window_bounds = array<i64: 8, 1>}, {transform_indices = @transform_4, window_bounds = array<i64: 8, 1>}]} {
    %c0 = arith.constant 0 : index
    %c0_0 = arith.constant 0 : index
    %0 = vector.load %arg1[%c0, %c0_0] : memref<8x32xf32, #tpu.memory_space<vmem>>, vector<8x32xf32>
    %c0_1 = arith.constant 0 : index
    %c0_2 = arith.constant 0 : index
    %1 = vector.load %arg2[%c0_1, %c0_2] : memref<8x32xf32, #tpu.memory_space<vmem>>, vector<8x32xf32>
    %2 = arith.subf %0, %1 : vector<8x32xf32>
    %cst = arith.constant 9.99999997E-7 : f32
    %3 = vector.broadcast %cst : f32 to vector<8x32xf32>
    %4 = arith.addf %2, %3 : vector<8x32xf32>
    %5 = arith.mulf %4, %4 : vector<8x32xf32>
    %cst_3 = arith.constant dense<0.000000e+00> : vector<8xf32>
    %6 = vector.multi_reduction <add>, %5, %cst_3 [1] : vector<8x32xf32> to vector<8xf32>
    %7 = vector.shape_cast %6 : vector<8xf32> to vector<8x1xf32>
    %8 = math.sqrt %7 : vector<8x1xf32>
    %c0_4 = arith.constant 0 : index
    %c0_5 = arith.constant 0 : index
    %9 = vector.load %arg3[%c0_4, %c0_5] : memref<8x1xf32, #tpu.memory_space<vmem>>, vector<8x1xf32>
    %cst_6 = arith.constant 5.000000e-01 : f32
    %10 = vector.broadcast %cst_6 : f32 to vector<8x1xf32>
    %11 = arith.subf %10, %8 : vector<8x1xf32>
    %cst_7 = arith.constant 0.000000e+00 : f32
    %12 = vector.broadcast %cst_7 : f32 to vector<8x1xf32>
    %13 = arith.maximumf %11, %12 : vector<8x1xf32>
    %c0_8 = arith.constant 0 : index
    %c0_9 = arith.constant 0 : index
    %14 = vector.load %arg4[%c0_8, %c0_9] : memref<8x1xf32, #tpu.memory_space<vmem>>, vector<8x1xf32>
    tpu.vector_store %arg4[%c0_8, %c0_9], %8 {strides = array<i32>} : memref<8x1xf32, #tpu.memory_space<vmem>>, vector<8x1xf32>,
    %15 = arith.mulf %9, %7 : vector<8x1xf32>
    %cst_10 = arith.constant 1.000000e+00 : f32
    %16 = vector.broadcast %cst_10 : f32 to vector<8x1xf32>
    %17 = arith.subf %16, %9 : vector<8x1xf32>
    %18 = arith.mulf %13, %13 : vector<8x1xf32>
    %19 = arith.mulf %17, %18 : vector<8x1xf32>
    %20 = arith.addf %15, %19 : vector<8x1xf32>
    %cst_11 = arith.constant 5.000000e-01 : f32
    %21 = vector.broadcast %cst_11 : f32 to vector<8x1xf32>
    %22 = arith.mulf %21, %20 : vector<8x1xf32>
    %c0_12 = arith.constant 0 : index
    %c0_13 = arith.constant 0 : index
    %23 = vector.load %arg5[%c0_12, %c0_13] : memref<8x1xf32, #tpu.memory_space<vmem>>, vector<8x1xf32>
    tpu.vector_store %arg5[%c0_12, %c0_13], %22 {strides = array<i32>} : memref<8x1xf32, #tpu.memory_space<vmem>>, vector<8x1xf32>,
    return
  }
  func.func @transform_0(%arg0: i32) -> (i32, i32) {
    %c0_i32 = arith.constant 0 : i32
    %c0_i32_0 = arith.constant 0 : i32
    return %arg0, %c0_i32 : i32, i32
  }
  func.func @transform_1(%arg0: i32) -> (i32, i32) {
    %c0_i32 = arith.constant 0 : i32
    %c0_i32_0 = arith.constant 0 : i32
    return %arg0, %c0_i32 : i32, i32
  }
  func.func @transform_2(%arg0: i32) -> (i32, i32) {
    %c0_i32 = arith.constant 0 : i32
    %c0_i32_0 = arith.constant 0 : i32
    return %arg0, %c0_i32 : i32, i32
  }
  func.func @transform_3(%arg0: i32) -> (i32, i32) {
    %c0_i32 = arith.constant 0 : i32
    %c0_i32_0 = arith.constant 0 : i32
    return %arg0, %c0_i32 : i32, i32
  }
  func.func @transform_4(%arg0: i32) -> (i32, i32) {
    %c0_i32 = arith.constant 0 : i32
    %c0_i32_0 = arith.constant 0 : i32
    return %arg0, %c0_i32 : i32, i32
  }
}

</mosaic_0001>

<bundles_post_ra>
// kernel: _contrastive_pallas.1
= control target key start
LH: loop header
LB: loop body
LE: loop exit
PB: predicated region body
PF: predicated region fallthrough
CT: control target
= control target key end

     0   :  { %10 = vsyncpa [#allocation3], 0  ;;  %s90_s15 = smov [#allocation2]   ;;  %s131_s0 = inlined_call_operand.vmem [shape: f32[8,32], index: 0, kind: input, shape index: {}]   ;;  %s132_s1 = inlined_call_operand.hbm [shape: f32[8,32], index: 1, kind: input, shape index: {}]   ;;  %s133_s2 = inlined_call_operand.vmem [shape: f32[8,1], index: 2, kind: input, shape index: {}]   ;;  %s134_s3 = inlined_call_operand.vmem [shape: f32[8,1], index: 3, kind: output, shape index: {0}]   ;;  %s135_s4 = inlined_call_operand.vmem [shape: f32[8,1], index: 4, kind: output, shape index: {1}]  }
   0x1   :  { %s19_s16 = sshll.u32 %s90_s15, 4  ;;  %s20_s16 = int_to_ptr.vmem [resolvable:$true] %s19_s16 }
   0x2   :  { %s76_s17 = scalar_lea.vmem %s20_s16, 128  ;;  %p81_p1 = scmp.lt.s32.totalorder %s20_s16, %s20_s16 }
   0x3   :  { %p77_p0 = scmp.ne.s32.totalorder %s20_s16, %s76_s17  ;;  %p82_p2 = scmp.lt.s32.totalorder %s76_s17, %s76_s17 }
   0x5   :  { %p83_p3 = por %p82_p2, %p81_p1 }
   0x7   :  { %p84_p4 = pnand %p83_p3, %p77_p0 }
   0x9   :  { %87 = shalt.err (!%p84_p4)
}
   0xa   :  { %22 = dma.hbm_to_vmem [thread:$0]  %s132_s1, 128, %s20_s16, [#allocation3]  }
   0xb   :  { %88 = dma.done.wait [#allocation3], 128  }
   0xc   :  { %89 = vsyncadd [#allocation3], 4294967168  ;;  %v28_v0 = vld [vmem:[%s131_s0] sm:$0xff]  ;;  %vm33_vm0 = vcmask 261120   ;;  %vm47_vm2 = vcmask 7168  }
   0xd   :  { %v29_v1 = vld [vmem:[#allocation2] sm:$0xff] }
   0xe   :  { %v30_v2 = vsub.f32 %v28_v0, %v29_v1  ;;  %v44_v13 = vld [vmem:[%s133_s2] sm:$0xff] }
   0xf   :  { %v50_v15 = vsub.f32 1.0, %v44_v13 }
  0x10   :  { %v31_v3 = vadd.f32 1e-06, %v30_v2 }
  0x12   :  { %v32_v4 = vmul.f32 %v31_v3, %v31_v3 }
  0x14   :  { %v34_v5 = vsel %vm33_vm0, %v32_v4, 0.0 }
  0x15   :  { %35 = vadd.xlane.f32.xlu0 %v34_v5 }
  0x9e   :  { %v36_v6 = vpop.xlane.xlu0 %35 }
  0x9f   :  { %66 = vrsqrt.f32 %v36_v6  ;;  %vm39_vm1 = vcmp.eq.f32.partialorder %v36_v6, inf  ;;  %v42_v9 = vand.u32 2147483648, %v36_v6  ;;  %vm41_vm3 = vcmp.eq.f32.partialorder %v36_v6, 0.0 }
  0xa0   :  { %v49_v17 = vmul.f32 %v44_v13, %v36_v6 }
  0xac   :  { %v67_v7 = vpop.eup %66 }
  0xad   :  { %v38_v8 = vmul.f32 %v67_v7, %v36_v6 }
  0xaf   :  { %v40_v10 = vsel %vm39_vm1, %v36_v6, %v38_v8 }
  0xb0   :  { %v43_v11 = vsel %vm41_vm3, %v42_v9, %v40_v10 }
  0xb1   :  { %v45_v12 = vsub.f32 0.5, %v43_v11  ;;  %48 = vst.msk [vmem:[%s134_s3] sm:$0xff] %vm47_vm2, %v43_v11 }
  0xb3   :  { %v46_v14 = vmax.f32 %v45_v12, 0.0 }
  0xb5   :  { %v51_v16 = vmul.f32 %v46_v14, %v46_v14 }
  0xb7   :  { %v52_v18 = vmul.f32 %v51_v16, %v50_v15 }
  0xb9   :  { %v53_v19 = vadd.f32 %v52_v18, %v49_v17 }
  0xbb   :  { %v54_v20 = vmul.f32 0.5, %v53_v19 }
  0xbd   :  { %55 = vst.msk [vmem:[%s135_s4] sm:$0xff] %vm47_vm2, %v54_v20 }
  0xbe   :  { %64 = vsyncpa [#allocation3], 1 }

</bundles_post_ra>
